<compile_context>
chip_gen: v6e
topology: v6e:2x2x1
jax: 0.10.0
libtpu: 0.0.40
codegen_flags: <defaults>
</compile_context>

<pallas_src>
import functools

import numpy as np
import jax
import jax.numpy as jnp
from jax.experimental import pallas as pl
from jax.experimental.pallas import tpu as pltpu

NEG_INF = -1e9


def _round_up(x, m):
    return (x + m - 1) // m * m


def _cdiv(a, b):
    return (a + b - 1) // b


def state_attention_kernel(x_ref, w_ref, u_ref, o_ref, *, valid_t):
    """One grid step: TB batch rows of the attention forward pass.

    x_ref: (TB, Tp, H)  seq block (input dtype)
    w_ref: (H, H)       w_omega (f32)
    u_ref: (1, H)       u_omega^T row (f32)
    o_ref: (TB, H)      output block
    """
    x = x_ref[...]                                   # (TB, Tp, H), input dtype
    TB, Tp, H = x.shape

    # --- fused projection: one (TB*Tp, H) @ (H, H) MXU matmul --------------
    # Collapsing the leading dims is layout-preserving because Tp % 8 == 0.
    xf = x.reshape(TB * Tp, H)
    u = jnp.tanh(jnp.dot(xf, w_ref[...], preferred_element_type=jnp.float32))
    u = u.reshape(TB, Tp, H)                         # (TB, Tp, H) f32

    # --- attention logits: lane reduction against the (1, H) u_omega row ---
    att = jnp.sum(u * u_ref[...], axis=-1, keepdims=True)   # (TB, Tp, 1)

    # Mask padded time steps (compile-time guarded; no-op when Tp == valid_t).
    if valid_t < Tp:
        t_idx = jax.lax.broadcasted_iota(jnp.int32, (TB, Tp, 1), 1)
        att = jnp.where(t_idx < valid_t, att, NEG_INF)

    # --- numerically stable softmax over time (sublane reductions) ---------
    m = jnp.max(att, axis=1, keepdims=True)          # (TB, 1, 1)
    e = jnp.exp(att - m)                             # (TB, Tp, 1)
    denom = jnp.sum(e, axis=1, keepdims=True)        # (TB, 1, 1)
    score = e * pl.reciprocal(denom, approx=True)    # (TB, Tp, 1), EUP recip

    # --- weighted sum over time on the VPU (multiply + sublane reduce) -----
    ctx = jnp.sum(x.astype(jnp.float32) * score, axis=1)    # (TB, H)
    o_ref[...] = ctx.astype(o_ref.dtype)


def state_attention(seq, w_omega, u_omega, *, block_b=None):
    """Pallas equivalent of state_attention.forward(seq)."""
    B, T, H = seq.shape
    assert w_omega.shape == (H, H)
    assert u_omega.shape == (H, 1)

    itemsize = jnp.dtype(seq.dtype).itemsize
    Tp = _round_up(T, 8)        # sublane-aligned time (in-kernel mask covers pad)

    # Batch tile: ~2 MiB streamed per step / >=512 fused matmul rows, but always
    # >=2 grid steps so the batch axis can pipeline / shard across TensorCores.
    if block_b is None:
        rows_target = max(512 // Tp, 1)
        bytes_target = max((2 << 20) // (Tp * H * itemsize), 1)
        block_b = max(rows_target, bytes_target)
    TB = max(min(block_b, max(_cdiv(B, 2), 1)), 1)
    nb = _cdiv(B, TB)
    Bp = nb * TB

    # Only pad when strictly required; aligned inputs stream straight from HBM.
    if Bp != B or Tp != T:
        seq_in = jnp.pad(seq, ((0, Bp - B), (0, Tp - T), (0, 0)))
    else:
        seq_in = seq
    w = w_omega.astype(jnp.float32)                  # (H, H)
    u_row = u_omega.astype(jnp.float32).T            # (1, H)

    # Explicit VMEM budget: double-buffered seq block + f32 intermediates.
    blk_in = TB * Tp * H * itemsize
    blk_f32 = TB * Tp * H * 4
    vmem_need = 2 * blk_in + 4 * blk_f32 + 4 * (H * H + 2 * H + TB * H) * 4
    vmem_limit = int(min(max(vmem_need + (2 << 20), 16 << 20), 48 << 20))

    kernel = functools.partial(state_attention_kernel, valid_t=T)

    out = pl.pallas_call(
        kernel,
        out_shape=jax.ShapeDtypeStruct((nb, TB, H), seq.dtype),
        grid_spec=pltpu.PrefetchScalarGridSpec(
            num_scalar_prefetch=0,
            grid=(nb,),
            in_specs=[
                # TODO(synk): add pipeline_mode=pl.Buffered(3) on this spec if
                # profiling still shows exposed DMA on the seq stream.
                pl.BlockSpec((TB, Tp, H), lambda b: (b, 0, 0)),   # seq block
                pl.BlockSpec((H, H), lambda b: (0, 0)),           # w_omega
                pl.BlockSpec((1, H), lambda b: (0, 0)),           # u_omega row
            ],
            out_specs=pl.BlockSpec((None, TB, H), lambda b: (b, 0, 0)),
        ),
        compiler_params=pltpu.CompilerParams(
            dimension_semantics=("parallel",),
            vmem_limit_bytes=vmem_limit),
    )(seq_in, w, u_row)

    return out.reshape(Bp, H)[:B]


def reference(seq, w_omega, u_omega):
    s = np.asarray(seq, np.float32)
    w = np.asarray(w_omega, np.float32)
    uo = np.asarray(u_omega, np.float32)
    u = np.tanh(s @ w)                               # (B, T, H)
    att = (u @ uo)[..., 0]                           # (B, T)
    att = att - att.max(axis=1, keepdims=True)
    e = np.exp(att)
    score = e / e.sum(axis=1, keepdims=True)         # (B, T)
    return (s * score[:, :, None]).sum(axis=1)       # (B, H)


if __name__ == "__main__":
    B, T, H = 2, 8, 32

    key = jax.random.PRNGKey(0)
    k_seq, k_w, k_u = jax.random.split(key, 3)
    seq = jax.random.normal(k_seq, (B, T, H), jnp.float32)
    # Matches nn.init.uniform_(param, -0.1, 0.1) initialization of the module.
    w_omega = jax.random.uniform(k_w, (H, H), jnp.float32, -0.1, 0.1)
    u_omega = jax.random.uniform(k_u, (H, 1), jnp.float32, -0.1, 0.1)

    out = state_attention(seq, w_omega, u_omega)
    out = jax.block_until_ready(out)

    ref = reference(seq, w_omega, u_omega)
    assert out.shape == (B, H), out.shape
    max_err = float(np.max(np.abs(np.asarray(out) - ref)))
    assert np.allclose(np.asarray(out), ref, atol=5e-3, rtol=5e-3), max_err
    print("KERNEL_OK")
</pallas_src>

<mosaic_0001>
module attributes {stable_mosaic.version = 11 : i64} {
  func.func @state_attention_kernel(%arg0: i32, %arg1: memref<1x8x32xf32, #tpu.memory_space<vmem>>, %arg2: memref<32x32xf32, #tpu.memory_space<vmem>>, %arg3: memref<1x32xf32, #tpu.memory_space<vmem>>, %arg4: memref<1x1x32xf32, #tpu.memory_space<vmem>>) attributes {dimension_semantics = [#tpu.dimension_semantics<parallel>], iteration_bounds = array<i64: 2>, scalar_prefetch = 0 : i64, scratch_operands = 0 : i64, tpu.core_type = #tpu.core_type<tc>, window_params = [{transform_indices = @transform_0, window_bounds = array<i64: 1, 8, 32>}, {pipeline_mode = #tpu.pipeline_mode<synchronous>, transform_indices = @transform_1, window_bounds = array<i64: 32, 32>}, {pipeline_mode = #tpu.pipeline_mode<synchronous>, transform_indices = @transform_2, window_bounds = array<i64: 1, 32>}, {transform_indices = @transform_3, window_bounds = array<i64: 1, 1, 32>}]} {
    %c0 = arith.constant 0 : index
    %c0_0 = arith.constant 0 : index
    %c0_1 = arith.constant 0 : index
    %0 = vector.load %arg1[%c0, %c0_0, %c0_1] : memref<1x8x32xf32, #tpu.memory_space<vmem>>, vector<1x8x32xf32>
    %1 = vector.shape_cast %0 : vector<1x8x32xf32> to vector<8x32xf32>
    %c0_2 = arith.constant 0 : index
    %c0_3 = arith.constant 0 : index
    %2 = vector.load %arg2[%c0_2, %c0_3] : memref<32x32xf32, #tpu.memory_space<vmem>>, vector<32x32xf32>
    %cst = arith.constant dense<0.000000e+00> : vector<8x32xf32>
    %3 = tpu.matmul %1, %2, %cst {dimension_numbers = #tpu.dot_dimension_numbers<[1], [0], [0], [1], [0, 0, 1, 1], [], []>} : vector<8x32xf32>, vector<32x32xf32>, vector<8x32xf32> -> vector<8x32xf32>
    %4 = math.tanh %3 : vector<8x32xf32>
    %5 = vector.shape_cast %4 : vector<8x32xf32> to vector<1x8x32xf32>
    %c0_4 = arith.constant 0 : index
    %c0_5 = arith.constant 0 : index
    %6 = vector.load %arg3[%c0_4, %c0_5] : memref<1x32xf32, #tpu.memory_space<vmem>>, vector<1x32xf32>
    %7 = vector.shape_cast %6 : vector<1x32xf32> to vector<1x1x32xf32>
    %8 = vector.broadcast %7 : vector<1x1x32xf32> to vector<1x8x32xf32>
    %9 = arith.mulf %5, %8 : vector<1x8x32xf32>
    %cst_6 = arith.constant dense<0.000000e+00> : vector<1x8xf32>
    %10 = vector.multi_reduction <add>, %9, %cst_6 [2] : vector<1x8x32xf32> to vector<1x8xf32>
    %11 = vector.shape_cast %10 : vector<1x8xf32> to vector<1x8x1xf32>
    %cst_7 = arith.constant dense<0xFF800000> : vector<1x1xf32>
    %12 = vector.multi_reduction <maximumf>, %11, %cst_7 [1] : vector<1x8x1xf32> to vector<1x1xf32>
    %13 = vector.shape_cast %12 : vector<1x1xf32> to vector<1x1x1xf32>
    %14 = vector.broadcast %13 : vector<1x1x1xf32> to vector<1x8x1xf32>
    %15 = arith.subf %11, %14 : vector<1x8x1xf32>
    %16 = math.exp %15 : vector<1x8x1xf32>
    %cst_8 = arith.constant dense<0.000000e+00> : vector<1x1xf32>
    %17 = vector.multi_reduction <add>, %16, %cst_8 [1] : vector<1x8x1xf32> to vector<1x1xf32>
    %18 = vector.shape_cast %17 : vector<1x1xf32> to vector<1x1x1xf32>
    %19 = tpu.reciprocal %18 {approx = true} : vector<1x1x1xf32> -> vector<1x1x1xf32>
    %20 = vector.broadcast %19 : vector<1x1x1xf32> to vector<1x8x1xf32>
    %21 = arith.mulf %16, %20 : vector<1x8x1xf32>
    %22 = vector.broadcast %21 : vector<1x8x1xf32> to vector<1x8x32xf32>
    %23 = arith.mulf %0, %22 : vector<1x8x32xf32>
    %cst_9 = arith.constant dense<0.000000e+00> : vector<1x32xf32>
    %24 = vector.multi_reduction <add>, %23, %cst_9 [1] : vector<1x8x32xf32> to vector<1x32xf32>
    %c0_10 = arith.constant 0 : index
    %c0_11 = arith.constant 0 : index
    %c0_12 = arith.constant 0 : index
    %25 = vector.load %arg4[%c0_10, %c0_11, %c0_12] : memref<1x1x32xf32, #tpu.memory_space<vmem>>, vector<1x1x32xf32>
    %26 = vector.shape_cast %25 : vector<1x1x32xf32> to vector<1x32xf32>
    %27 = vector.shape_cast %24 : vector<1x32xf32> to vector<1x1x32xf32>
    tpu.vector_store %arg4[%c0_10, %c0_11, %c0_12], %27 {strides = array<i32>} : memref<1x1x32xf32, #tpu.memory_space<vmem>>, vector<1x1x32xf32>,
    return
  }
  func.func @transform_0(%arg0: i32) -> (i32, i32, i32) {
    %c0_i32 = arith.constant 0 : i32
    %c0_i32_0 = arith.constant 0 : i32
    %c0_i32_1 = arith.constant 0 : i32
    return %arg0, %c0_i32, %c0_i32_0 : i32, i32, i32
  }
  func.func @transform_1(%arg0: i32) -> (i32, i32) {
    %c0_i32 = arith.constant 0 : i32
    %c0_i32_0 = arith.constant 0 : i32
    %c0_i32_1 = arith.constant 0 : i32
    return %c0_i32, %c0_i32_0 : i32, i32
  }
  func.func @transform_2(%arg0: i32) -> (i32, i32) {
    %c0_i32 = arith.constant 0 : i32
    %c0_i32_0 = arith.constant 0 : i32
    %c0_i32_1 = arith.constant 0 : i32
    return %c0_i32, %c0_i32_0 : i32, i32
  }
  func.func @transform_3(%arg0: i32) -> (i32, i32, i32) {
    %c0_i32 = arith.constant 0 : i32
    %c0_i32_0 = arith.constant 0 : i32
    %c0_i32_1 = arith.constant 0 : i32
    return %arg0, %c0_i32, %c0_i32_0 : i32, i32, i32
  }
}

</mosaic_0001>

<bundles_post_ra>
// kernel: tpu_custom_call.1
= control target key start
LH: loop header
LB: loop body
LE: loop exit
PB: predicated region body
PF: predicated region fallthrough
CT: control target
= control target key end

     0   :  { %8 = vsyncpa [#allocation3], 0  ;;  %s816_s0 = inlined_call_operand.hbm [shape: f32[2,8,32], index: 0, kind: input, shape index: {}]   ;;  %s817_s1 = inlined_call_operand.hbm [shape: f32[32,32], index: 1, kind: input, shape index: {}]   ;;  %s818_s2 = inlined_call_operand.vmem [shape: f32[1,32], index: 2, kind: input, shape index: {}]   ;;  %s819_s3 = inlined_call_operand.hbm [shape: f32[2,1,32], index: 3, kind: output, shape index: {}]  }
   0x1   :  { %10 = vsyncpa [#allocation3 + $0x1], 0 }
   0x2   :  { %11 = vsyncpa [#allocation6], 0 }
   0x3   :  { %12 = vsyncpa [#allocation4], 0 }
   0x4   :  { %14 = vsyncpa [#allocation4 + $0x1], 0  ;;  %s655_s12 = smov 0   ;;  %s657_s13 = smov 0  }
   0x5   :  { %s659_s14 = smov 0   ;;  %s661_s15 = smov 0  }
   0x6 LB: > { %s676_s16 = sadd.s32 4294967295, %s626_s15   ;;  %s407_s17 = sadd.s32 4294967294, %s626_s15   ;;  %s626_s15 = sphi %s661_s15, %s841_s15   ;;  %s622_s14 = sphi %s659_s14, %s840_s14   ;;  %s618_s13 = sphi %s657_s13, %s839_s13   ;;  %s614_s12 = sphi %s655_s12, %s838_s12  }
   0x7   : > { %p40_p0 = scmp.ne.s32.totalorder %s618_s13, %s614_s12  ;;  %p820_p1 = scmp.eq.s32.totalorder %s676_s16, 0 }
   0x8   : > { %p112_p3 = scmp.eq.s32.totalorder %s407_s17, 1  ;;  %p408_p5 = scmp.ge.s32.totalorder %s626_s15, 1 }
   0x9   : > { %p685_p4 = por %p820_p1, %p40_p0  ;;  %p119_p7 = scmp.lt.s32.totalorder %s626_s15, 3 }
   0xa   : > { %p690_p6 = por %p112_p3, %p40_p0  ;;  %s628_s21 = smov [#allocation5]  }
   0xb   : > { %s824_s18 = scalar_select %p685_p4, 1, 0 }
   0xc   : > { %s825_s19 = scalar_select %p690_p6, 1, 0 }
   0xd   : > { %p695_p8 = pnand %p408_p5, %p119_p7  ;;  %s131_s22 = sshll.u32 %s628_s21, 4  ;;  %s132_s22 = int_to_ptr.vmem [resolvable:$true] %s131_s22 }
   0xe   : > { %s709_s24 = sadd.s32 1, %s626_s15   ;;  %s27_s25 = sadd.s32 1, %s622_s14 }
   0xf   : > { %s826_s20 = scalar_select %p695_p8, 1, 0 }
  0x10   : > { %p445_p9 = pneg %p695_p8  ;;  %s24_s26 = ssub.s32 %s626_s15, %s709_s24 }
  0x11   : > { %s515_s27 = scalar_lea.vmem %s132_s22, 512  ;;  %p523_p5 = scmp.lt.s32.totalorder %s132_s22, %s132_s22 }
  0x12   : > { %p704_p11 = pnand %p445_p9, %p820_p1  ;;  %p516_p13 = scmp.ne.s32.totalorder %s132_s22, %s515_s27 }
  0x13   : > { %p524_p7 = scmp.lt.s32.totalorder %s515_s27, %s515_s27 }
  0x14   : > { %p506_p12 = pneg %p704_p11 }
  0x15   : > { %p525_p10 = por %p524_p7, %p523_p5 }
  0x16   : > { %p518_p0 = pnand %p516_p13, %p506_p12 }
  0x18   : > { %p519_p3 = pneg %p518_p0 }
  0x1a   : > { %p526_p2 = pnand %p525_p10, %p519_p3 }
  0x1c   : > { %529 = shalt.err (!%p526_p2)
}
  0x1d   : > { %s629_s28 = smov 128   ;;  %s630_s29 = smov 8  }
  0x1e   : > { %448 = dma.hbm_to_vmem [thread:$0]  (!%p704_p11), %s817_s1, 512, %s132_s22, [#allocation6], %s629_s28, %s629_s28, %s630_s29  }
  0x1f   : > { %p25_p9 = scmp.eq.s32.totalorder %s24_s26, 0  ;;  %p34_p12 = scmp.ne.s32.totalorder %s622_s14, %s618_s13 }
  0x20   : > { %p35_p10 = scmp.eq.s32.totalorder %s626_s15, 0  ;;  %p458_p2 = scmp.lt.s32.totalorder %s626_s15, 2 }
  0x21   : > { %s726_s5 = scalar_select %p25_p9, %s622_s14, %s27_s25  }
  0x22   : > { %p36_p13 = por %p35_p10, %p34_p12  ;;  %p828_p0 = scmp.eq.s32.totalorder %s676_s16, 1 }
  0x23   : > { %s148_s7 = sand.u32 1, %s622_s14   ;;  %s412_s8 = sshll.u32 %s626_s15, 7 }
  0x24   : > { %p730_p3 = por %p828_p0, %p34_p12  ;;  %s411_s9 = sshll.u32 %s148_s7, 3 }
  0x25   : > { %s739_s17 = scalar_lea.hbm %s816_s0, %s412_s8  ;;  %s152_s21 = scalar_lea.vmem [#allocation2], %s411_s9 }
  0x26   : > { %s829_s6 = scalar_select %p730_p3, 1, 0 }
  0x27   : > { %s159_s22 = sshll.u32 %s152_s21, 4  ;;  %p741_p11 = pnand %p458_p2, %p36_p13  ;;  %s160_s22 = int_to_ptr.vmem [resolvable:$true] %s159_s22 }
  0x28   : > { %s149_s25 = scalar_lea.sflag [#allocation3], %s148_s7  ;;  %s530_s26 = scalar_lea.hbm %s739_s17, 128 }
  0x29   : > { %p531_p5 = scmp.ne.s32.totalorder %s739_s17, %s530_s26  ;;  %p532_p7 = pneg %p741_p11 }
  0x2a   : > { %s535_s29 = scalar_lea.hbm %s816_s0, 256  ;;  %p536_p10 = scmp.lt.s32.totalorder %s739_s17, %s816_s0 }
  0x2b   : > { %p533_p9 = pnand %p532_p7, %p531_p5  ;;  %p537_p2 = scmp.lt.s32.totalorder %s535_s29, %s530_s26 }
  0x2d   : > { %p534_p12 = pneg %p533_p9  ;;  %p538_p13 = por %p537_p2, %p536_p10 }
  0x2f   : > { %p539_p0 = pnand %p538_p13, %p534_p12 }
  0x31   : > { %542 = shalt.err (!%p539_p0)
}
  0x32   : > { %s543_s8 = scalar_lea.vmem %s160_s22, 128  ;;  %s631_s7 = smov [#allocation2]  }
  0x33   : > { %p544_p1 = scmp.ne.s32.totalorder %s160_s22, %s543_s8  ;;  %s548_s9 = sshll.u32 %s631_s7, 4  ;;  %s549_s9 = int_to_ptr.vmem [resolvable:$false] %s548_s9 }
  0x34   : > { %s550_s10 = scalar_lea.vmem %s549_s9, 256  ;;  %p551_p5 = scmp.lt.s32.totalorder %s160_s22, %s549_s9 }
  0x35   : > { %p546_p6 = pnand %p544_p1, %p532_p7  ;;  %p552_p9 = scmp.lt.s32.totalorder %s550_s10, %s543_s8 }
  0x37   : > { %p547_p3 = pneg %p546_p6  ;;  %p553_p4 = por %p552_p9, %p551_p5 }
  0x39   : > { %p554_p8 = pnand %p553_p4, %p547_p3 }
  0x3b   : > { %557 = shalt.err (!%p554_p8)
}
  0x3c   : > { %452 = dma.hbm_to_vmem [thread:$0]  (!%p741_p11), %s739_s17, 128, %s160_s22, %s149_s25  }
  0x3d   : > { %p831_p12 = scmp.ne.s32.totalorder %s826_s20, 0 }
  0x3e   : > { %s762_s11 = sand.u32 (!%p831_p12), 1, %s618_s13   ;;  %p832_p1 = scmp.ne.s32.totalorder (!%p831_p12), %s824_s18, 0 }
  0x3f   : > { %168 = sbr.rel (%p831_p12) target bundleno = 515 (0x203), region = 32  ;;  %s414_s21 = sshll.u32 (!%p831_p12), %s762_s11, 3 }
  0x40   : > { %s171_s26 = scalar_lea.sflag (!%p831_p12), [#allocation3], %s762_s11  ;;  %s174_s27 = scalar_lea.vmem (!%p831_p12), [#allocation2], %s414_s21 }
  0x44   : > { %601 = dma.done.wait (%p832_p1), %s171_s26, 128  }
  0x45   : > { %603 = vsyncadd (%p832_p1), %s171_s26, 4294967168  ;;  %p833_p4 = scmp.eq.s32.totalorder %s676_s16, 0 }
  0x47   : > { %605 = dma.done.wait (%p833_p4), [#allocation6], 512   ;;  %p834_p6 = pmov %p833_p4 }
  0x48   : > { %v632_v0 = vmov 0.0   ;;  %vm633_vm0 = vmmov 0   ;;  %v204_v1 = vld [vmem:[#allocation5 + $0x18] sm:$0xff]  ;;  %v203_v2 = vld [vmem:[#allocation5 + $0x10] sm:$0xff]  ;;  %v202_v3 = vld [vmem:[#allocation5 + $0x8] sm:$0xff]  ;;  %vm205_vm1 = vcmask 261120  }
  0x49   : > { %607 = vsyncadd (%p834_p6), [#allocation6], 4294966784  ;;  %426 = vmatprep.subr.mxu0 %v632_v0  ;;  %434 = vmatprep.mubr.msk.f32.mxu0 %vm633_vm0, %v632_v0  ;;  %v201_v4 = vld [vmem:[#allocation5] sm:$0xff]  ;;  %v200_v5 = vld [vmem:[%s174_s27] sm:$0xff]  ;;  %s418_s17 = sshll.u32 %s676_s16, 4  ;;  %s199_s22 = scalar_lea.vmem [#allocation7], %s762_s11 }
  0x4a   : > { %427 = vmatpush3.msra.mxu0 %v204_v1  ;;  %v417_v8 = vld [vmem:[%s818_s2] ss:$0 sm:$0xff]  ;;  %s331_s23 = sshll.u32 %s199_s22, 4  ;;  %vm316_vm2 = vcmask 253952   ;;  %s329_s29 = scalar_lea.hbm %s819_s3, %s418_s17  ;;  %s332_s23 = int_to_ptr.vmem [resolvable:$true] %s331_s23 }
  0x4b   : > { %428 = vmatprep.subr.mxu0 %v632_v0  ;;  %s319_s30 = scalar_lea.sflag [#allocation4], %s762_s11  ;;  %s558_s4 = scalar_lea.vmem %s332_s23, 16 }
  0x4c   : > { %429 = vmatpush3.msra.mxu0 %v203_v2  ;;  %p559_p8 = scmp.ne.s32.totalorder %s332_s23, %s558_s4  ;;  %p835_p3 = scmp.ne.s32.totalorder %s829_s6, 0 }
  0x4d   : > { %430 = vmatprep.subr.mxu0 %v632_v0  ;;  %s634_s8 = smov [#allocation7]  }
  0x4e   : > { %431 = vmatpush3.msra.mxu0 %v202_v3  ;;  %p560_p11 = pnand %p559_p8, %p835_p3  ;;  %s562_s7 = sshll.u32 %s634_s8, 4  ;;  %s563_s7 = int_to_ptr.vmem [resolvable:$false] %s562_s7 }
  0x4f   : > { %432 = vmatprep.subr.mxu0 %v632_v0  ;;  %s564_s16 = scalar_lea.vmem %s563_s7, 32  ;;  %p565_p10 = scmp.lt.s32.totalorder %s332_s23, %s563_s7 }
  0x50   : > { %433 = vmatpush3.msra.mxu0 %v201_v4  ;;  %p561_p7 = pneg %p560_p11  ;;  %p566_p2 = scmp.lt.s32.totalorder %s564_s16, %s558_s4 }
  0x51   : > { %435 = vmatmul.mubr.msk.f32.vlgmr.msra.gmra.mxu0 %vm205_vm1, %v200_v5 }
  0x52   : > { %p567_p13 = por %p566_p2, %p565_p10 }
  0x54   : > { %p568_p0 = pnand %p567_p13, %p561_p7 }
 0x111   : > { %v275_v6 = vpop.f32.mrf.mxu0 }
 0x112   : > { %498 = vtanh.f32 %v275_v6 }
 0x113   : > { %v436_v7 = vpop.f32.mrf.mxu0 }
 0x11f   : > { %v499_v9 = vpop.eup %498 }
 0x120   : > { %v287_v10 = vmul.f32 %v499_v9, %v417_v8 }
 0x122   : > { %v288_v11 = vsel %vm205_vm1, %v287_v10, 0.0 }
 0x123   : > { %289 = vadd.xlane.f32.xlu0 %v288_v11 }
 0x1ac   : > { %v290_v12 = vpop.xlane.xlu0 %289 }
 0x1ad   : > { %v291_v13 = vrot.slane %v290_v12, 4 }
 0x1af   : > { %v292_v14 = vmax.f32 %v290_v12, %v291_v13 }
 0x1b1   : > { %v293_v15 = vrot.slane %v292_v14, 2 }
 0x1b3   : > { %v294_v16 = vmax.f32 %v292_v14, %v293_v15 }
 0x1b5   : > { %v295_v17 = vrot.slane %v294_v16, 1 }
 0x1b7   : > { %v296_v18 = vmax.f32 %v294_v16, %v295_v17 }
 0x1b9   : > { %v297_v19 = vsub.f32 %v290_v12, %v296_v18 }
 0x1bb   : > { %v298_v20 = vmul.f32 1.442695, %v297_v19 }
 0x1bd   : > { %500 = vpow2.f32 %v298_v20 }
 0x1ca   : > { %v501_v21 = vpop.eup %500 }
 0x1cb   : > { %v300_v22 = vrot.slane %v501_v21, 4 }
 0x1cd   : > { %v301_v23 = vadd.f32 %v501_v21, %v300_v22 }
 0x1cf   : > { %v302_v24 = vrot.slane %v301_v23, 2 }
 0x1d1   : > { %v303_v25 = vadd.f32 %v302_v24, %v301_v23 }
 0x1d3   : > { %v304_v26 = vrot.slane %v303_v25, 1 }
 0x1d5   : > { %v305_v27 = vadd.f32 %v304_v26, %v303_v25 }
 0x1d7   : > { %502 = vrcp.f32 %v305_v27 }
 0x1e4   : > { %v503_v28 = vpop.eup %502 }
 0x1e5   : > { %v307_v29 = vmul.f32 %v503_v28, %v501_v21 }
 0x1e7   : > { %v308_v30 = vmul.f32 %v307_v29, %v200_v5 }
 0x1e9   : > { %v309_v31 = vsel %vm205_vm1, %v308_v30, 0.0 }
 0x1ea   : > { %v310_v32 = vrot.slane %v309_v31, 4 }
 0x1ec   : > { %v311_v33 = vadd.f32 %v310_v32, %v309_v31 }
 0x1ee   : > { %v312_v34 = vrot.slane %v311_v33, 2 }
 0x1f0   : > { %v313_v35 = vadd.f32 %v312_v34, %v311_v33 }
 0x1f2   : > { %v314_v36 = vrot.slane %v313_v35, 1 }
 0x1f4   : > { %v315_v37 = vadd.f32 %v314_v36, %v313_v35 }
 0x1f6   : > { %317 = vst.msk [vmem:[%s199_s22] sm:$0x1] %vm316_vm2, %v315_v37 }
 0x1f7   : > { %571 = shalt.err (!%p568_p0)
}
 0x1f8   : > { %s572_s9 = scalar_lea.hbm %s329_s29, 16  ;;  %s576_s21 = scalar_lea.hbm %s819_s3, 32 }
 0x1f9   : > { %p573_p5 = scmp.ne.s32.totalorder %s329_s29, %s572_s9  ;;  %p577_p1 = scmp.lt.s32.totalorder %s329_s29, %s819_s3 }
 0x1fa   : > { %p578_p4 = scmp.lt.s32.totalorder %s576_s21, %s572_s9 }
 0x1fb   : > { %p574_p9 = pnand %p573_p5, %p835_p3 }
 0x1fc   : > { %p579_p6 = por %p578_p4, %p577_p1 }
 0x1fd   : > { %p575_p12 = pneg %p574_p9 }
 0x1ff   : > { %p580_p8 = pnand %p579_p6, %p575_p12 }
 0x201   : > { %583 = shalt.err (!%p580_p8)
}
 0x202   : > { %443 = dma.vmem_to_hbm [thread:$0]  (%p835_p3), %s332_s23, 16, %s329_s29, %s319_s30  }
 0x203 PF: > { %s343_s18 = sand.u32 1, %s614_s12   ;;  %p836_p11 = scmp.ne.s32.totalorder %s825_s19, 0 }
 0x204   : > { %p837_p7 = scmp.ge.s32.totalorder %s626_s15, 2  ;;  %s344_s20 = scalar_lea.sflag [#allocation4], %s343_s18 }
 0x206   : > { %p454_p10 = pnand %p837_p7, %p836_p11 }
 0x208   : > { %p455_p2 = pneg %p454_p10 }
 0x20a   : > { %609 = dma.done.wait (%p455_p2), %s344_s20, 16  }
 0x20b   : > { %611 = vsyncadd (%p455_p2), %s344_s20, 4294967280  ;;  %p17_p13 = scmp.ge.s32.totalorder %s709_s24, 4   ;;  %s838_s12 = smov %s618_s13 }
 0x20c   : > { %s839_s13 = smov %s622_s14  ;;  %s840_s14 = smov %s726_s5 }
 0x20d   : > { %s841_s15 = smov %s709_s24  ;;  %19 = sbr.rel (!%p17_p13) target bundleno = 6 (0x6), region = 81 }
 0x212   :  { %348 = vsyncpa [#allocation3], 1 }
 0x213   :  { %350 = vsyncpa [#allocation3 + $0x1], 1 }
 0x214   :  { %351 = vsyncpa [#allocation6], 1 }
 0x215   :  { %352 = vsyncpa [#allocation4], 1 }
 0x216   :  { %354 = vsyncpa [#allocation4 + $0x1], 1 }

</bundles_post_ra>
